<compile_context>
chip_gen: v6e
topology: v6e:2x2x1
jax: 0.10.0
libtpu: 0.0.40
codegen_flags: <defaults>
</compile_context>

<pallas_src>
import functools

import jax
import jax.numpy as jnp
from jax.experimental import pallas as pl
from jax.experimental.pallas import tpu as pltpu


# ----------------------------------------------------------------------------
# tile pickers (keep TPU (8,128) block constraints and avoid ragged blocks)
# ----------------------------------------------------------------------------
def _round_up(x, m):
    return ((x + m - 1) // m) * m


def _pick_tile_m(dim, preferred):
    """Largest multiple-of-8 divisor of `dim` that is <= preferred, else full dim."""
    t = (min(preferred, dim) // 8) * 8
    while t >= 8:
        if dim % t == 0:
            return t
        t -= 8
    return dim


def _pick_tile_k(dim, preferred):
    """Largest multiple-of-128 divisor of `dim` that is <= preferred, else full dim."""
    t = (min(preferred, dim) // 128) * 128
    while t >= 128:
        if dim % t == 0:
            return t
        t -= 128
    return dim


_VMEM_LIMIT = 32 * 1024 * 1024  # safe on v5e/v6e (128 MiB phys) and v7x (64 MiB phys)


# ----------------------------------------------------------------------------
# Pallas kernels
# ----------------------------------------------------------------------------
def _matmul_bias_kernel(a_ref, b_ref, bias_ref, o_ref, acc_ref, *, relu):
    """K-tiled (tm, tk) @ (tk, N) with f32 VMEM accumulator; bias (+ReLU) epilogue."""
    k = pl.program_id(1)

    @pl.when(k == 0)
    def _init():
        acc_ref[...] = jnp.zeros_like(acc_ref)

    acc_ref[...] += jnp.dot(a_ref[...], b_ref[...], preferred_element_type=jnp.float32)

    @pl.when(k == pl.num_programs(1) - 1)
    def _epilogue():
        out = acc_ref[...] + bias_ref[...][0:1, :]
        if relu:
            out = jnp.maximum(out, 0.0)
        o_ref[...] = out.astype(o_ref.dtype)


def matmul_bias(a, b, bias, *, relu=False, out_dtype=jnp.float32, tm=512, tk=1024):
    """(M, K) @ (K, N) + bias[N].  Operands fed to the MXU in bf16, f32 accumulation."""
    M, K = a.shape
    K2, N = b.shape
    assert K == K2
    tm = _pick_tile_m(M, tm)
    tk = _pick_tile_k(K, tk)

    a = a.astype(jnp.bfloat16)
    b = b.astype(jnp.bfloat16)
    bias8 = jnp.broadcast_to(bias.astype(jnp.float32).reshape(1, N), (8, N))

    return pl.pallas_call(
        functools.partial(_matmul_bias_kernel, relu=relu),
        out_shape=jax.ShapeDtypeStruct((M, N), out_dtype),
        grid=(M // tm, K // tk),
        in_specs=[
            pl.BlockSpec((tm, tk), lambda i, k: (i, k)),
            pl.BlockSpec((tk, N), lambda i, k: (k, 0)),
            pl.BlockSpec((8, N), lambda i, k: (0, 0)),
        ],
        out_specs=pl.BlockSpec((tm, N), lambda i, k: (i, 0)),
        scratch_shapes=[pltpu.VMEM((tm, N), jnp.float32)],
        compiler_params=pltpu.CompilerParams(
            dimension_semantics=("parallel", "arbitrary"),
            vmem_limit_bytes=_VMEM_LIMIT,
        ),
    )(a, b, bias8)


def _deconv_head_kernel(a_ref, b_ref, bias_ref, hw_ref, hb_ref,
                        x1_ref, heat_ref, acc_ref):
    """Per-phase deconv GEMM (K-tiled, f32 acc) with fused bias+ReLU and fused 1x1 head."""
    k = pl.program_id(2)

    @pl.when(k == 0)
    def _init():
        acc_ref[...] = jnp.zeros_like(acc_ref)

    acc_ref[...] += jnp.dot(a_ref[0], b_ref[0], preferred_element_type=jnp.float32)

    @pl.when(k == pl.num_programs(2) - 1)
    def _epilogue():
        x1 = jnp.maximum(acc_ref[...] + bias_ref[...][0:1, :], 0.0)   # (tm, F) f32
        x1_ref[0] = x1.astype(x1_ref.dtype)
        heat = jnp.dot(x1.astype(hw_ref.dtype), hw_ref[...],
                       preferred_element_type=jnp.float32)
        heat_ref[0] = (heat + hb_ref[...][0:1, :]).astype(heat_ref.dtype)


# Sub-pixel decomposition of ConvTranspose2d(k=4, s=2, p=1):
# output row 2r+ph uses kernel taps {1,3} (ph=0) / {0,2} (ph=1) at padded input rows
# r+1, r / r+2, r+1 respectively.  (kernel_tap_index, padded_slice_start) pairs:
_PHASE_TAPS = {0: ((1, 1), (3, 0)), 1: ((0, 2), (2, 1))}


def subpixel_deconv_head(feat_nhwc, up_w, up_b, head_w, head_b, *, tm=256, tk=1024):
    """feat_nhwc: (N, H, W, C) bf16.  up_w: (C, F, 4, 4).  Returns (heat, x1) in NCHW."""
    N, H, W, C = feat_nhwc.shape
    Cw, F, kh, kw = up_w.shape
    assert (Cw, kh, kw) == (C, 4, 4)
    Kpt = head_w.shape[1]
    Kp = _round_up(Kpt, 128)            # lane-dense heat stores
    M = N * H * W

    # Patch extraction directly in channels-last (no NCHW transposes, no zero dilation).
    xpad = jnp.pad(feat_nhwc, ((0, 0), (1, 1), (1, 1), (0, 0)))
    pats, wmats = [], []
    for ph in (0, 1):
        for pw in (0, 1):
            blocks, rows = [], []
            for kh_i, hs in _PHASE_TAPS[ph]:
                for kw_i, ws in _PHASE_TAPS[pw]:
                    blocks.append(xpad[:, hs:hs + H, ws:ws + W, :])
                    rows.append(up_w[:, :, kh_i, kw_i])               # (C, F)
            pats.append(jnp.concatenate(blocks, axis=-1).reshape(M, 4 * C))
            wmats.append(jnp.concatenate(rows, axis=0))               # (4*C, F)
    pat_all = jnp.stack(pats, axis=0).astype(jnp.bfloat16)            # (4, M, 4C)
    w_all = jnp.stack(wmats, axis=0).astype(jnp.bfloat16)             # (4, 4C, F)

    bias8 = jnp.broadcast_to(up_b.astype(jnp.float32).reshape(1, F), (8, F))
    hw = jnp.zeros((F, Kp), jnp.bfloat16).at[:, :Kpt].set(head_w.astype(jnp.bfloat16))
    hb = jnp.zeros((8, Kp), jnp.float32).at[:, :Kpt].set(
        jnp.broadcast_to(head_b.astype(jnp.float32).reshape(1, Kpt), (8, Kpt)))

    Kred = 4 * C
    tm = _pick_tile_m(M, tm)
    tk = _pick_tile_k(Kred, tk)
    grid = (4, M // tm, Kred // tk)

    x1_all, heat_all = pl.pallas_call(
        _deconv_head_kernel,
        out_shape=(jax.ShapeDtypeStruct((4, M, F), jnp.float32),
                   jax.ShapeDtypeStruct((4, M, Kp), jnp.float32)),
        grid=grid,
        in_specs=[
            pl.BlockSpec((1, tm, tk), lambda p, i, k: (p, i, k)),
            pl.BlockSpec((1, tk, F), lambda p, i, k: (p, k, 0)),
            pl.BlockSpec((8, F), lambda p, i, k: (0, 0)),
            pl.BlockSpec((F, Kp), lambda p, i, k: (0, 0)),
            pl.BlockSpec((8, Kp), lambda p, i, k: (0, 0)),
        ],
        out_specs=(
            pl.BlockSpec((1, tm, F), lambda p, i, k: (p, i, 0)),
            pl.BlockSpec((1, tm, Kp), lambda p, i, k: (p, i, 0)),
        ),
        scratch_shapes=[pltpu.VMEM((tm, F), jnp.float32)],
        compiler_params=pltpu.CompilerParams(
            dimension_semantics=("parallel", "parallel", "arbitrary"),
            vmem_limit_bytes=_VMEM_LIMIT,
        ),
    )(pat_all, w_all, bias8, hw, hb)

    # Interleave the 4 phases spatially and emit PyTorch NCHW outputs.
    Ho, Wo = 2 * H, 2 * W
    x1 = (x1_all.reshape(2, 2, N, H, W, F)
          .transpose(2, 5, 3, 0, 4, 1).reshape(N, F, Ho, Wo))
    heat = (heat_all[:, :, :Kpt].reshape(2, 2, N, H, W, Kpt)
            .transpose(2, 5, 3, 0, 4, 1).reshape(N, Kpt, Ho, Wo))
    return heat, x1


# ----------------------------------------------------------------------------
# PoseResNet forward (glue in plain JAX, compute in Pallas)
# ----------------------------------------------------------------------------
def pose_resnet_forward(x_nhwc, params, *, return_fea=True):
    N, H, W, Cin = x_nhwc.shape
    C = params["bb_w"].shape[1]

    # ---- backbone stand-in with cwT folded in (exact algebra: y = (xW+b)(A+1)+B)
    scale = params["cwt_A"] + 1.0
    w_bb = params["bb_w"] * scale[None, :]
    b_bb = params["bb_b"] * scale + params["cwt_B"]
    feat = matmul_bias(x_nhwc.reshape(N * H * W, Cin), w_bb, b_bb,
                       out_dtype=jnp.bfloat16)                 # (M, C) channels-last
    feat = feat.reshape(N, H, W, C)

    # ---- permute NHWC->NCHW is implicit (channels-last layout kept; identical math)
    # ---- upsampling (4-phase deconv + ReLU) with the 1x1 head fused into its epilogue
    heat, x1 = subpixel_deconv_head(feat, params["up_w"], params["up_b"],
                                    params["head_w"], params["head_b"])
    if return_fea:
        return heat, x1
    return heat


# ----------------------------------------------------------------------------
# Pure-JAX reference (mirrors the PyTorch module order; bf16 casts at the same
# points the kernels quantize their inputs)
# ----------------------------------------------------------------------------
def _reference_forward(x_nhwc, params):
    bf = lambda t: t.astype(jnp.bfloat16).astype(jnp.float32)
    N, H, W, Cin = x_nhwc.shape
    C = params["bb_w"].shape[1]
    F = params["up_w"].shape[1]

    # backbone stand-in (per-pixel projection), then permute, then cwT (unfused)
    feat = (bf(x_nhwc).reshape(N * H * W, Cin) @ bf(params["bb_w"])
            + params["bb_b"]).reshape(N, H, W, C).transpose(0, 3, 1, 2)   # NCHW
    feat = (feat * (params["cwt_A"] + 1.0)[None, :, None, None]
            + params["cwt_B"][None, :, None, None])

    # ConvTranspose2d(C, F, 4, 2, 1) + ReLU via scatter-add
    w_up = bf(params["up_w"])
    T = jnp.einsum('nihw,iokl->nohkwl', bf(feat), w_up)                   # (N,F,H,4,W,4)
    full = jnp.zeros((N, F, 2 * H + 2, 2 * W + 2), jnp.float32)
    for kh in range(4):
        for kw in range(4):
            full = full.at[:, :, kh:kh + 2 * H:2, kw:kw + 2 * W:2].add(T[:, :, :, kh, :, kw])
    x1 = jnp.maximum(full[:, :, 1:1 + 2 * H, 1:1 + 2 * W]
                     + params["up_b"][None, :, None, None], 0.0)

    # head: 1x1 conv
    heat = (jnp.einsum('nchw,ck->nkhw', bf(x1), bf(params["head_w"]))
            + params["head_b"][None, :, None, None])
    return heat, x1


# ----------------------------------------------------------------------------
# Deterministic synthetic parameters (shapes follow __init__)
# ----------------------------------------------------------------------------
def init_params(key, *, c_in, c_feat, feature_dim, num_keypoints, k=4):
    ks = jax.random.split(key, 7)
    return {
        # TODO(synk): real ResNet backbone is an injected module; stand-in 1x1 projection.
        "bb_w": jax.random.normal(ks[0], (c_in, c_feat), jnp.float32) * 0.5,
        "bb_b": jax.random.normal(ks[1], (c_feat,), jnp.float32) * 0.1,
        # cwT params (module inits them to zeros; nonzero here so the fold is exercised)
        "cwt_A": jax.random.normal(ks[2], (c_feat,), jnp.float32) * 0.1,
        "cwt_B": jax.random.normal(ks[3], (c_feat,), jnp.float32) * 0.1,
        # upsampling stand-in: ConvTranspose2d(c_feat, feature_dim, 4, 2, 1) + ReLU
        "up_w": jax.random.normal(ks[4], (c_feat, feature_dim, k, k), jnp.float32) * 0.15,
        "up_b": jax.random.normal(ks[5], (feature_dim,), jnp.float32) * 0.1,
        # head: Conv2d(feature_dim, num_keypoints, 1).  Module spec uses std=0.001 /
        # bias=0; larger synthetic values used here only to make the numeric check strict.
        "head_w": jax.random.normal(ks[6], (feature_dim, num_keypoints), jnp.float32) * 0.05,
        "head_b": jax.random.normal(ks[6], (num_keypoints,), jnp.float32) * 0.1,
    }


if __name__ == "__main__":
    import numpy as np

    key = jax.random.PRNGKey(0)
    kx, kp = jax.random.split(key)

    # H, W here are the backbone OUTPUT resolution (typical 8x8 for Simple Baseline).
    N, H, W, C_IN = 2, 8, 8, 4
    C_FEAT, FEATURE_DIM, NUM_KPTS = 32, 32, 17

    x = jax.random.normal(kx, (N, H, W, C_IN), jnp.float32)   # backbone input, NHWC
    params = init_params(kp, c_in=C_IN, c_feat=C_FEAT,
                         feature_dim=FEATURE_DIM, num_keypoints=NUM_KPTS)

    fwd = jax.jit(functools.partial(pose_resnet_forward, return_fea=True))
    heat, x1 = fwd(x, params)
    jax.block_until_ready((heat, x1))

    assert heat.shape == (N, NUM_KPTS, 2 * H, 2 * W), heat.shape
    assert x1.shape == (N, FEATURE_DIM, 2 * H, 2 * W), x1.shape

    heat_ref, x1_ref = _reference_forward(x, params)
    np.testing.assert_allclose(np.asarray(x1), np.asarray(x1_ref), rtol=5e-2, atol=1e-1)
    np.testing.assert_allclose(np.asarray(heat), np.asarray(heat_ref), rtol=5e-2, atol=5e-2)

    print("KERNEL_OK")
</pallas_src>

<mosaic_0001>
module attributes {stable_mosaic.version = 11 : i64} {
  func.func @_matmul_bias_kernel(%arg0: i32, %arg1: i32, %arg2: memref<128x4xbf16, #tpu.memory_space<vmem>>, %arg3: memref<4x32xbf16, #tpu.memory_space<vmem>>, %arg4: memref<8x32xf32, #tpu.memory_space<vmem>>, %arg5: memref<128x32xbf16, #tpu.memory_space<vmem>>, %arg6: memref<128x32xf32, #tpu.memory_space<vmem>>) attributes {dimension_semantics = [#tpu.dimension_semantics<parallel>, #tpu.dimension_semantics<arbitrary>], iteration_bounds = array<i64: 1, 1>, scalar_prefetch = 0 : i64, scratch_operands = 1 : i64, tpu.core_type = #tpu.core_type<tc>, window_params = [{transform_indices = @transform_0, window_bounds = array<i64: 128, 4>}, {transform_indices = @transform_1, window_bounds = array<i64: 4, 32>}, {pipeline_mode = #tpu.pipeline_mode<synchronous>, transform_indices = @transform_2, window_bounds = array<i64: 8, 32>}, {transform_indices = @transform_3, window_bounds = array<i64: 128, 32>}]} {
    %c0_i32 = arith.constant 0 : i32
    %0 = arith.cmpi eq, %arg1, %c0_i32 : i32
    %1 = arith.extui %0 : i1 to i32
    %c0_i32_0 = arith.constant 0 : i32
    %2 = arith.cmpi ne, %1, %c0_i32_0 : i32
    scf.if %2 {
      %cst_10 = arith.constant 0.000000e+00 : f32
      %12 = vector.broadcast %cst_10 : f32 to vector<128x32xf32>
      %c0_11 = arith.constant 0 : index
      %c0_12 = arith.constant 0 : index
      %13 = vector.load %arg6[%c0_11, %c0_12] : memref<128x32xf32, #tpu.memory_space<vmem>>, vector<128x32xf32>
      tpu.vector_store %arg6[%c0_11, %c0_12], %12 {strides = array<i32>} : memref<128x32xf32, #tpu.memory_space<vmem>>, vector<128x32xf32>,
    } else {
    }
    %c0 = arith.constant 0 : index
    %c0_1 = arith.constant 0 : index
    %3 = vector.load %arg6[%c0, %c0_1] : memref<128x32xf32, #tpu.memory_space<vmem>>, vector<128x32xf32>
    %c0_2 = arith.constant 0 : index
    %c0_3 = arith.constant 0 : index
    %4 = vector.load %arg2[%c0_2, %c0_3] : memref<128x4xbf16, #tpu.memory_space<vmem>>, vector<128x4xbf16>
    %c0_4 = arith.constant 0 : index
    %c0_5 = arith.constant 0 : index
    %5 = vector.load %arg3[%c0_4, %c0_5] : memref<4x32xbf16, #tpu.memory_space<vmem>>, vector<4x32xbf16>
    %cst = arith.constant dense<0.000000e+00> : vector<128x32xf32>
    %6 = tpu.matmul %4, %5, %cst {dimension_numbers = #tpu.dot_dimension_numbers<[1], [0], [0], [1], [0, 0, 1, 1], [], []>} : vector<128x4xbf16>, vector<4x32xbf16>, vector<128x32xf32> -> vector<128x32xf32>
    %7 = arith.addf %3, %6 : vector<128x32xf32>
    %c0_6 = arith.constant 0 : index
    %c0_7 = arith.constant 0 : index
    %8 = vector.load %arg6[%c0_6, %c0_7] : memref<128x32xf32, #tpu.memory_space<vmem>>, vector<128x32xf32>
    tpu.vector_store %arg6[%c0_6, %c0_7], %7 {strides = array<i32>} : memref<128x32xf32, #tpu.memory_space<vmem>>, vector<128x32xf32>,
    %c0_i32_8 = arith.constant 0 : i32
    %9 = arith.cmpi eq, %arg1, %c0_i32_8 : i32
    %10 = arith.extui %9 : i1 to i32
    %c0_i32_9 = arith.constant 0 : i32
    %11 = arith.cmpi ne, %10, %c0_i32_9 : i32
    scf.if %11 {
      %c0_10 = arith.constant 0 : index
      %c0_11 = arith.constant 0 : index
      %12 = vector.load %arg6[%c0_10, %c0_11] : memref<128x32xf32, #tpu.memory_space<vmem>>, vector<128x32xf32>
      %c0_12 = arith.constant 0 : index
      %c0_13 = arith.constant 0 : index
      %13 = vector.load %arg4[%c0_12, %c0_13] : memref<8x32xf32, #tpu.memory_space<vmem>>, vector<8x32xf32>
      %14 = vector.extract_strided_slice %13 {offsets = [0, 0], sizes = [1, 32], strides = [1, 1]} : vector<8x32xf32> to vector<1x32xf32>
      %15 = vector.broadcast %14 : vector<1x32xf32> to vector<128x32xf32>
      %16 = arith.addf %12, %15 : vector<128x32xf32>
      %17 = arith.truncf %16 : vector<128x32xf32> to vector<128x32xbf16>
      %c0_14 = arith.constant 0 : index
      %c0_15 = arith.constant 0 : index
      %18 = vector.load %arg5[%c0_14, %c0_15] : memref<128x32xbf16, #tpu.memory_space<vmem>>, vector<128x32xbf16>
      tpu.vector_store %arg5[%c0_14, %c0_15], %17 {strides = array<i32>} : memref<128x32xbf16, #tpu.memory_space<vmem>>, vector<128x32xbf16>,
    } else {
    }
    return
  }
  func.func @transform_0(%arg0: i32, %arg1: i32) -> (i32, i32) {
    %c0_i32 = arith.constant 0 : i32
    return %arg0, %arg1 : i32, i32
  }
  func.func @transform_1(%arg0: i32, %arg1: i32) -> (i32, i32) {
    %c0_i32 = arith.constant 0 : i32
    %c0_i32_0 = arith.constant 0 : i32
    return %arg1, %c0_i32 : i32, i32
  }
  func.func @transform_2(%arg0: i32, %arg1: i32) -> (i32, i32) {
    %c0_i32 = arith.constant 0 : i32
    %c0_i32_0 = arith.constant 0 : i32
    %c0_i32_1 = arith.constant 0 : i32
    return %c0_i32, %c0_i32_0 : i32, i32
  }
  func.func @transform_3(%arg0: i32, %arg1: i32) -> (i32, i32) {
    %c0_i32 = arith.constant 0 : i32
    %c0_i32_0 = arith.constant 0 : i32
    return %arg0, %c0_i32 : i32, i32
  }
}

module attributes {stable_mosaic.version = 11 : i64} {
  func.func @_deconv_head_kernel(%arg0: i32, %arg1: i32, %arg2: i32, %arg3: memref<1x128x128xbf16, #tpu.memory_space<vmem>>, %arg4: memref<1x128x32xbf16, #tpu.memory_space<vmem>>, %arg5: memref<8x32xf32, #tpu.memory_space<vmem>>, %arg6: memref<32x128xbf16, #tpu.memory_space<vmem>>, %arg7: memref<8x128xf32, #tpu.memory_space<vmem>>, %arg8: memref<1x128x32xf32, #tpu.memory_space<vmem>>, %arg9: memref<1x128x128xf32, #tpu.memory_space<vmem>>, %arg10: memref<128x32xf32, #tpu.memory_space<vmem>>) attributes {dimension_semantics = [#tpu.dimension_semantics<parallel>, #tpu.dimension_semantics<parallel>, #tpu.dimension_semantics<arbitrary>], iteration_bounds = array<i64: 4, 1, 1>, scalar_prefetch = 0 : i64, scratch_operands = 1 : i64, tpu.core_type = #tpu.core_type<tc>, window_params = [{transform_indices = @transform_0, window_bounds = array<i64: 1, 128, 128>}, {transform_indices = @transform_1, window_bounds = array<i64: 1, 128, 32>}, {pipeline_mode = #tpu.pipeline_mode<synchronous>, transform_indices = @transform_2, window_bounds = array<i64: 8, 32>}, {pipeline_mode = #tpu.pipeline_mode<synchronous>, transform_indices = @transform_3, window_bounds = array<i64: 32, 128>}, {pipeline_mode = #tpu.pipeline_mode<synchronous>, transform_indices = @transform_4, window_bounds = array<i64: 8, 128>}, {transform_indices = @transform_5, window_bounds = array<i64: 1, 128, 32>}, {transform_indices = @transform_6, window_bounds = array<i64: 1, 128, 128>}]} {
    %c0_i32 = arith.constant 0 : i32
    %0 = arith.cmpi eq, %arg2, %c0_i32 : i32
    %1 = arith.extui %0 : i1 to i32
    %c0_i32_0 = arith.constant 0 : i32
    %2 = arith.cmpi ne, %1, %c0_i32_0 : i32
    scf.if %2 {
      %cst_12 = arith.constant 0.000000e+00 : f32
      %14 = vector.broadcast %cst_12 : f32 to vector<128x32xf32>
      %c0_13 = arith.constant 0 : index
      %c0_14 = arith.constant 0 : index
      %15 = vector.load %arg10[%c0_13, %c0_14] : memref<128x32xf32, #tpu.memory_space<vmem>>, vector<128x32xf32>
      tpu.vector_store %arg10[%c0_13, %c0_14], %14 {strides = array<i32>} : memref<128x32xf32, #tpu.memory_space<vmem>>, vector<128x32xf32>,
    } else {
    }
    %c0 = arith.constant 0 : index
    %c0_1 = arith.constant 0 : index
    %3 = vector.load %arg10[%c0, %c0_1] : memref<128x32xf32, #tpu.memory_space<vmem>>, vector<128x32xf32>
    %c0_2 = arith.constant 0 : index
    %c0_3 = arith.constant 0 : index
    %c0_4 = arith.constant 0 : index
    %4 = vector.load %arg3[%c0_2, %c0_3, %c0_4] : memref<1x128x128xbf16, #tpu.memory_space<vmem>>, vector<1x128x128xbf16>
    %5 = vector.shape_cast %4 : vector<1x128x128xbf16> to vector<128x128xbf16>
    %c0_5 = arith.constant 0 : index
    %c0_6 = arith.constant 0 : index
    %c0_7 = arith.constant 0 : index
    %6 = vector.load %arg4[%c0_5, %c0_6, %c0_7] : memref<1x128x32xbf16, #tpu.memory_space<vmem>>, vector<1x128x32xbf16>
    %7 = vector.shape_cast %6 : vector<1x128x32xbf16> to vector<128x32xbf16>
    %cst = arith.constant dense<0.000000e+00> : vector<128x32xf32>
    %8 = tpu.matmul %5, %7, %cst {dimension_numbers = #tpu.dot_dimension_numbers<[1], [0], [0], [1], [0, 0, 1, 1], [], []>} : vector<128x128xbf16>, vector<128x32xbf16>, vector<128x32xf32> -> vector<128x32xf32>
    %9 = arith.addf %3, %8 : vector<128x32xf32>
    %c0_8 = arith.constant 0 : index
    %c0_9 = arith.constant 0 : index
    %10 = vector.load %arg10[%c0_8, %c0_9] : memref<128x32xf32, #tpu.memory_space<vmem>>, vector<128x32xf32>
    tpu.vector_store %arg10[%c0_8, %c0_9], %9 {strides = array<i32>} : memref<128x32xf32, #tpu.memory_space<vmem>>, vector<128x32xf32>,
    %c0_i32_10 = arith.constant 0 : i32
    %11 = arith.cmpi eq, %arg2, %c0_i32_10 : i32
    %12 = arith.extui %11 : i1 to i32
    %c0_i32_11 = arith.constant 0 : i32
    %13 = arith.cmpi ne, %12, %c0_i32_11 : i32
    scf.if %13 {
      %c0_12 = arith.constant 0 : index
      %c0_13 = arith.constant 0 : index
      %14 = vector.load %arg10[%c0_12, %c0_13] : memref<128x32xf32, #tpu.memory_space<vmem>>, vector<128x32xf32>
      %c0_14 = arith.constant 0 : index
      %c0_15 = arith.constant 0 : index
      %15 = vector.load %arg5[%c0_14, %c0_15] : memref<8x32xf32, #tpu.memory_space<vmem>>, vector<8x32xf32>
      %16 = vector.extract_strided_slice %15 {offsets = [0, 0], sizes = [1, 32], strides = [1, 1]} : vector<8x32xf32> to vector<1x32xf32>
      %17 = vector.broadcast %16 : vector<1x32xf32> to vector<128x32xf32>
      %18 = arith.addf %14, %17 : vector<128x32xf32>
      %cst_16 = arith.constant 0.000000e+00 : f32
      %19 = vector.broadcast %cst_16 : f32 to vector<128x32xf32>
      %20 = arith.maximumf %18, %19 : vector<128x32xf32>
      %c0_17 = arith.constant 0 : index
      %c0_18 = arith.constant 0 : index
      %c0_19 = arith.constant 0 : index
      %21 = vector.load %arg8[%c0_17, %c0_18, %c0_19] : memref<1x128x32xf32, #tpu.memory_space<vmem>>, vector<1x128x32xf32>
      %22 = vector.shape_cast %21 : vector<1x128x32xf32> to vector<128x32xf32>
      %23 = vector.shape_cast %20 : vector<128x32xf32> to vector<1x128x32xf32>
      tpu.vector_store %arg8[%c0_17, %c0_18, %c0_19], %23 {strides = array<i32>} : memref<1x128x32xf32, #tpu.memory_space<vmem>>, vector<1x128x32xf32>,
      %24 = arith.truncf %20 : vector<128x32xf32> to vector<128x32xbf16>
      %c0_20 = arith.constant 0 : index
      %c0_21 = arith.constant 0 : index
      %25 = vector.load %arg6[%c0_20, %c0_21] : memref<32x128xbf16, #tpu.memory_space<vmem>>, vector<32x128xbf16>
      %cst_22 = arith.constant dense<0.000000e+00> : vector<128x128xf32>
      %26 = tpu.matmul %24, %25, %cst_22 {dimension_numbers = #tpu.dot_dimension_numbers<[1], [0], [0], [1], [0, 0, 1, 1], [], []>} : vector<128x32xbf16>, vector<32x128xbf16>, vector<128x128xf32> -> vector<128x128xf32>
      %c0_23 = arith.constant 0 : index
      %c0_24 = arith.constant 0 : index
      %27 = vector.load %arg7[%c0_23, %c0_24] : memref<8x128xf32, #tpu.memory_space<vmem>>, vector<8x128xf32>
      %28 = vector.extract_strided_slice %27 {offsets = [0, 0], sizes = [1, 128], strides = [1, 1]} : vector<8x128xf32> to vector<1x128xf32>
      %29 = vector.broadcast %28 : vector<1x128xf32> to vector<128x128xf32>
      %30 = arith.addf %26, %29 : vector<128x128xf32>
      %c0_25 = arith.constant 0 : index
      %c0_26 = arith.constant 0 : index
      %c0_27 = arith.constant 0 : index
      %31 = vector.load %arg9[%c0_25, %c0_26, %c0_27] : memref<1x128x128xf32, #tpu.memory_space<vmem>>, vector<1x128x128xf32>
      %32 = vector.shape_cast %31 : vector<1x128x128xf32> to vector<128x128xf32>
      %33 = vector.shape_cast %30 : vector<128x128xf32> to vector<1x128x128xf32>
      tpu.vector_store %arg9[%c0_25, %c0_26, %c0_27], %33 {strides = array<i32>} : memref<1x128x128xf32, #tpu.memory_space<vmem>>, vector<1x128x128xf32>,
    } else {
    }
    return
  }
  func.func @transform_0(%arg0: i32, %arg1: i32, %arg2: i32) -> (i32, i32, i32) {
    %c0_i32 = arith.constant 0 : i32
    return %arg0, %arg1, %arg2 : i32, i32, i32
  }
  func.func @transform_1(%arg0: i32, %arg1: i32, %arg2: i32) -> (i32, i32, i32) {
    %c0_i32 = arith.constant 0 : i32
    %c0_i32_0 = arith.constant 0 : i32
    return %arg0, %arg2, %c0_i32 : i32, i32, i32
  }
  func.func @transform_2(%arg0: i32, %arg1: i32, %arg2: i32) -> (i32, i32) {
    %c0_i32 = arith.constant 0 : i32
    %c0_i32_0 = arith.constant 0 : i32
    %c0_i32_1 = arith.constant 0 : i32
    return %c0_i32, %c0_i32_0 : i32, i32
  }
  func.func @transform_3(%arg0: i32, %arg1: i32, %arg2: i32) -> (i32, i32) {
    %c0_i32 = arith.constant 0 : i32
    %c0_i32_0 = arith.constant 0 : i32
    %c0_i32_1 = arith.constant 0 : i32
    return %c0_i32, %c0_i32_0 : i32, i32
  }
  func.func @transform_4(%arg0: i32, %arg1: i32, %arg2: i32) -> (i32, i32) {
    %c0_i32 = arith.constant 0 : i32
    %c0_i32_0 = arith.constant 0 : i32
    %c0_i32_1 = arith.constant 0 : i32
    return %c0_i32, %c0_i32_0 : i32, i32
  }
  func.func @transform_5(%arg0: i32, %arg1: i32, %arg2: i32) -> (i32, i32, i32) {
    %c0_i32 = arith.constant 0 : i32
    %c0_i32_0 = arith.constant 0 : i32
    return %arg0, %arg1, %c0_i32 : i32, i32, i32
  }
  func.func @transform_6(%arg0: i32, %arg1: i32, %arg2: i32) -> (i32, i32, i32) {
    %c0_i32 = arith.constant 0 : i32
    %c0_i32_0 = arith.constant 0 : i32
    return %arg0, %arg1, %c0_i32 : i32, i32, i32
  }
}

</mosaic_0001>

<bundles_post_ra>
// kernel: pose_resnet_forward.2
= control target key start
LH: loop header
LB: loop body
LE: loop exit
PB: predicated region body
PF: predicated region fallthrough
CT: control target
= control target key end

     0   :  { %vm134_vm0 = vcmask 1041408   ;;  %vm109_vm1 = vcmask 31744   ;;  %vm19_vm2 = vcmask 261120   ;;  %v481_v1 = vmov 0.0   ;;  %s657_s1 = inlined_call_operand.vmem [shape: bf16[4,32], index: 1, kind: input, shape index: {}]   ;;  %s658_s0 = inlined_call_operand.vmem [shape: bf16[128,4], index: 0, kind: input, shape index: {}]   ;;  %s659_s2 = inlined_call_operand.vmem [shape: f32[8,32], index: 2, kind: input, shape index: {}]   ;;  %s660_s3 = inlined_call_operand.vmem [shape: bf16[128,32], index: 3, kind: output, shape index: {}]  }
   0x1   :  { %v68_v0 = vld [vmem:[%s657_s1] sm:$0x3]  ;;  %22 = vst.msk [vmem:[#allocation2 + $0x10] sm:$0xff] %vm19_vm2, %v481_v1  ;;  %20 = vst.msk [vmem:[#allocation2] sm:$0xff] %vm19_vm2, %v481_v1  ;;  %v475_v5 = vld [vmem:[%s658_s0 + $0x8] sm:$0xff]   ;;  %v288_v11 = vlaneseq  ;;  %vm372_vm3 = vcmask 257024  }
   0x2   :  { %21 = vst.msk [vmem:[#allocation2 + $0x8] sm:$0xff] %vm19_vm2, %v481_v1  ;;  %23 = vst.msk [vmem:[#allocation2 + $0x18] sm:$0xff] %vm19_vm2, %v481_v1  ;;  %470 = vmatprep.subr.msk.bf16.mxu0 %vm134_vm0, %v68_v0  ;;  %471 = vmatprep.subr.msk.bf16.mxu1 %vm134_vm0, %v68_v0  ;;  %v136_v2 = vsel %vm134_vm0, %v68_v0, 0  ;;  %v473_v3 = vld [vmem:[%s658_s0] sm:$0xff]   ;;  %v476_v6 = vld [vmem:[%s658_s0 + $0x28] sm:$0xff]  }
   0x3   :  { %24 = vst.msk [vmem:[#allocation2 + $0x20] sm:$0xff] %vm19_vm2, %v481_v1  ;;  %25 = vst.msk [vmem:[#allocation2 + $0x28] sm:$0xff] %vm19_vm2, %v481_v1  ;;  %451 = vmatpush3.bf16.msra.mxu0 %v136_v2  ;;  %469 = vmatpush3.bf16.msra.mxu1 %v136_v2  ;;  %v474_v4 = vld [vmem:[%s658_s0 + $0x20] sm:$0xff]   ;;  %v477_v7 = vld [vmem:[%s658_s0 + $0x10] sm:$0xff]   ;;  %v289_v13 = vshrl.u32 %v288_v11, 7 }
   0x4   :  { %26 = vst.msk [vmem:[#allocation2 + $0x30] sm:$0xff] %vm19_vm2, %v481_v1  ;;  %27 = vst.msk [vmem:[#allocation2 + $0x38] sm:$0xff] %vm19_vm2, %v481_v1  ;;  %452 = vmatprep.mubr.msk.bf16.mxu0 %vm109_vm1, %v473_v3  ;;  %460 = vmatprep.mubr.msk.bf16.mxu1 %vm109_vm1, %v474_v4  ;;  %v478_v8 = vld [vmem:[%s658_s0 + $0x30] sm:$0xff]   ;;  %v479_v9 = vld [vmem:[%s658_s0 + $0x18] sm:$0xff]  }
   0x5   :  { %28 = vst.msk [vmem:[#allocation2 + $0x40] sm:$0xff] %vm19_vm2, %v481_v1  ;;  %29 = vst.msk [vmem:[#allocation2 + $0x48] sm:$0xff] %vm19_vm2, %v481_v1  ;;  %v480_v10 = vld [vmem:[%s658_s0 + $0x38] sm:$0xff]   ;;  %v290_v23 = vsub.s32 0, %v289_v13  ;;  %v287_v27 = vld [vmem:[%s659_s2] sm:$0xff] }
   0x6   :  { %30 = vst.msk [vmem:[#allocation2 + $0x50] sm:$0xff] %vm19_vm2, %v481_v1  ;;  %31 = vst.msk [vmem:[#allocation2 + $0x58] sm:$0xff] %vm19_vm2, %v481_v1  ;;  %453 = vmatmul.mubr.msk.bf16.vlgmr.msra.gmra.mxu0 %vm109_vm1, %v475_v5  ;;  %461 = vmatmul.mubr.msk.bf16.vlgmr.msra.gmra.mxu1 %vm109_vm1, %v476_v6 }
   0x7   :  { %32 = vst.msk [vmem:[#allocation2 + $0x60] sm:$0xff] %vm19_vm2, %v481_v1  ;;  %33 = vst.msk [vmem:[#allocation2 + $0x68] sm:$0xff] %vm19_vm2, %v481_v1  ;;  %456 = vmatprep.mubr.msk.bf16.mxu0 %vm109_vm1, %v477_v7  ;;  %464 = vmatprep.mubr.msk.bf16.mxu1 %vm109_vm1, %v478_v8  ;;  %v563_v37 = vrot.slane %v287_v27, %v290_v23 }
   0x8   :  { %34 = vst.msk [vmem:[#allocation2 + $0x70] sm:$0xff] %vm19_vm2, %v481_v1  ;;  %35 = vst.msk [vmem:[#allocation2 + $0x78] sm:$0xff] %vm19_vm2, %v481_v1  ;;  %v38_v12 = vld [vmem:[#allocation2 + $0x10] sm:$0xff]  ;;  %v36_v16 = vld [vmem:[#allocation2] sm:$0xff] }
   0x9   :  { %v39_v22 = vld [vmem:[#allocation2 + $0x18] sm:$0xff]  ;;  %v37_v30 = vld [vmem:[#allocation2 + $0x8] sm:$0xff] }
   0xa   :  { %v40_v43 = vld [vmem:[#allocation2 + $0x20] sm:$0xff]  ;;  %v41_v60 = vld [vmem:[#allocation2 + $0x28] sm:$0xff] }
   0xb   :  { %v42_v36 = vld [vmem:[#allocation2 + $0x30] sm:$0xff]  ;;  %v43_v50 = vld [vmem:[#allocation2 + $0x38] sm:$0xff] }
   0xc   :  { %v44_v19 = vld [vmem:[#allocation2 + $0x40] sm:$0xff]  ;;  %v45_v33 = vld [vmem:[#allocation2 + $0x48] sm:$0xff] }
   0xd   :  { %v46_v14 = vld [vmem:[#allocation2 + $0x50] sm:$0xff]  ;;  %v47_v26 = vld [vmem:[#allocation2 + $0x58] sm:$0xff] }
   0xe   :  { %457 = vmatmul.mubr.msk.bf16.gmra.mxu0 %vm109_vm1, %v479_v9  ;;  %465 = vmatmul.mubr.msk.bf16.gmra.mxu1 %vm109_vm1, %v480_v10  ;;  %v48_v46 = vld [vmem:[#allocation2 + $0x60] sm:$0xff]  ;;  %v49_v2 = vld [vmem:[#allocation2 + $0x68] sm:$0xff] }
   0xf   :  { %v50_v40 = vld [vmem:[#allocation2 + $0x70] sm:$0xff]  ;;  %v51_v55 = vld [vmem:[#allocation2 + $0x78] sm:$0xff] }
  0xc6   :  { %v454_v15 = vpop.f32.mrf.mxu0  ;;  %v462_v18 = vpop.f32.mrf.mxu1 }
  0xc7   :  { %v237_v17 = vadd.f32 %v454_v15, %v38_v12  ;;  %v245_v20 = vadd.f32 %v462_v18, %v46_v14 }
  0xc8   :  { %v172_v21 = vpop.f32.mrf.mxu0  ;;  %v204_v25 = vpop.f32.mrf.mxu1 }
  0xc9   :  { %254 = vst.msk [vmem:[#allocation2 + $0x10] sm:$0xff] %vm19_vm2, %v237_v17  ;;  %v235_v24 = vadd.f32 %v172_v21, %v36_v16  ;;  %262 = vst.msk [vmem:[#allocation2 + $0x50] sm:$0xff] %vm19_vm2, %v245_v20  ;;  %v243_v28 = vadd.f32 %v204_v25, %v44_v19 }
  0xca   :  { %v455_v29 = vpop.f32.mrf.mxu0  ;;  %v463_v32 = vpop.f32.mrf.mxu1 }
  0xcb   :  { %252 = vst.msk [vmem:[#allocation2] sm:$0xff] %vm19_vm2, %v235_v24  ;;  %v238_v31 = vadd.f32 %v455_v29, %v39_v22  ;;  %260 = vst.msk [vmem:[#allocation2 + $0x40] sm:$0xff] %vm19_vm2, %v243_v28  ;;  %v246_v34 = vadd.f32 %v463_v32, %v47_v26 }
  0xcc   :  { %v175_v35 = vpop.f32.mrf.mxu0  ;;  %v207_v39 = vpop.f32.mrf.mxu1 }
  0xcd   :  { %255 = vst.msk [vmem:[#allocation2 + $0x18] sm:$0xff] %vm19_vm2, %v238_v31  ;;  %v236_v38 = vadd.f32 %v175_v35, %v37_v30  ;;  %263 = vst.msk [vmem:[#allocation2 + $0x58] sm:$0xff] %vm19_vm2, %v246_v34  ;;  %v244_v41 = vadd.f32 %v207_v39, %v45_v33 }
  0xce   :  { %v458_v42 = vpop.f32.mrf.mxu0  ;;  %v466_v45 = vpop.f32.mrf.mxu1 }
  0xcf   :  { %253 = vst.msk [vmem:[#allocation2 + $0x8] sm:$0xff] %vm19_vm2, %v236_v38  ;;  %v241_v44 = vadd.f32 %v458_v42, %v42_v36  ;;  %261 = vst.msk [vmem:[#allocation2 + $0x48] sm:$0xff] %vm19_vm2, %v244_v41  ;;  %v249_v48 = vadd.f32 %v466_v45, %v50_v40 }
  0xd0   :  { %v273_v47 = vld [vmem:[#allocation2 + $0x10] sm:$0xff]  ;;  %v188_v49 = vpop.f32.mrf.mxu0  ;;  %v220_v54 = vpop.f32.mrf.mxu1 }
  0xd1   :  { %v294_v51 = vadd.f32 %v563_v37, %v273_v47  ;;  %v281_v52 = vld [vmem:[#allocation2 + $0x50] sm:$0xff]  ;;  %258 = vst.msk [vmem:[#allocation2 + $0x30] sm:$0xff] %vm19_vm2, %v241_v44  ;;  %v239_v53 = vadd.f32 %v188_v49, %v40_v43  ;;  %266 = vst.msk [vmem:[#allocation2 + $0x70] sm:$0xff] %vm19_vm2, %v249_v48  ;;  %v247_v58 = vadd.f32 %v220_v54, %v48_v46 }
  0xd2   :  { %v302_v56 = vadd.f32 %v563_v37, %v281_v52  ;;  %v271_v57 = vld [vmem:[#allocation2] sm:$0xff]  ;;  %v459_v59 = vpop.f32.mrf.mxu0  ;;  %v467_v1 = vpop.f32.mrf.mxu1 }
  0xd3   :  { %v427_v61 = vpack.c.bf16 %v294_v51, %v294_v51  ;;  %v292_v62 = vadd.f32 %v563_v37, %v271_v57  ;;  %v279_v63 = vld [vmem:[#allocation2 + $0x40] sm:$0xff]  ;;  %256 = vst.msk [vmem:[#allocation2 + $0x20] sm:$0xff] %vm19_vm2, %v239_v53  ;;  %v242_v0 = vadd.f32 %v459_v59, %v43_v50  ;;  %264 = vst.msk [vmem:[#allocation2 + $0x60] sm:$0xff] %vm19_vm2, %v247_v58 }
  0xd4   :  { %v435_v3 = vpack.c.bf16 %v302_v56, %v302_v56  ;;  %v300_v4 = vadd.f32 %v563_v37, %v279_v63  ;;  %v274_v5 = vld [vmem:[#allocation2 + $0x18] sm:$0xff]  ;;  %v250_v6 = vadd.f32 %v467_v1, %v51_v55  ;;  %v191_v7 = vpop.f32.mrf.mxu0  ;;  %v223_v12 = vpop.f32.mrf.mxu1 }
  0xd5   :  { %375 = vst.msk [vmem:[%s660_s3 + $0x8] sm:$0xf] %vm372_vm3, %v427_v61  ;;  %v425_v8 = vpack.c.bf16 %v292_v62, %v292_v62  ;;  %v295_v9 = vadd.f32 %v563_v37, %v274_v5  ;;  %v282_v10 = vld [vmem:[#allocation2 + $0x58] sm:$0xff]  ;;  %v240_v11 = vadd.f32 %v191_v7, %v41_v60  ;;  %v248_v16 = vadd.f32 %v223_v12, %v49_v2 }
  0xd6   :  { %259 = vst.msk [vmem:[#allocation2 + $0x38] sm:$0xff] %vm19_vm2, %v242_v0  ;;  %v433_v13 = vpack.c.bf16 %v300_v4, %v300_v4  ;;  %v303_v14 = vadd.f32 %v563_v37, %v282_v10  ;;  %v272_v15 = vld [vmem:[#allocation2 + $0x8] sm:$0xff]  ;;  %267 = vst.msk [vmem:[#allocation2 + $0x78] sm:$0xff] %vm19_vm2, %v250_v6 }
  0xd7   :  { %383 = vst.msk [vmem:[%s660_s3 + $0x28] sm:$0xf] %vm372_vm3, %v435_v3  ;;  %373 = vst.msk [vmem:[%s660_s3] sm:$0xf] %vm372_vm3, %v425_v8  ;;  %v428_v17 = vpack.c.bf16 %v295_v9, %v295_v9  ;;  %v293_v18 = vadd.f32 %v563_v37, %v272_v15  ;;  %v280_v19 = vld [vmem:[#allocation2 + $0x48] sm:$0xff] }
  0xd8   :  { %257 = vst.msk [vmem:[#allocation2 + $0x28] sm:$0xff] %vm19_vm2, %v240_v11  ;;  %v436_v20 = vpack.c.bf16 %v303_v14, %v303_v14  ;;  %v301_v21 = vadd.f32 %v563_v37, %v280_v19  ;;  %v277_v22 = vld [vmem:[#allocation2 + $0x30] sm:$0xff]  ;;  %265 = vst.msk [vmem:[#allocation2 + $0x68] sm:$0xff] %vm19_vm2, %v248_v16 }
  0xd9   :  { %381 = vst.msk [vmem:[%s660_s3 + $0x20] sm:$0xf] %vm372_vm3, %v433_v13  ;;  %376 = vst.msk [vmem:[%s660_s3 + $0xc] sm:$0xf] %vm372_vm3, %v428_v17  ;;  %v426_v23 = vpack.c.bf16 %v293_v18, %v293_v18  ;;  %v298_v24 = vadd.f32 %v563_v37, %v277_v22  ;;  %v285_v25 = vld [vmem:[#allocation2 + $0x70] sm:$0xff] }
  0xda   :  { %384 = vst.msk [vmem:[%s660_s3 + $0x2c] sm:$0xf] %vm372_vm3, %v436_v20  ;;  %v434_v26 = vpack.c.bf16 %v301_v21, %v301_v21  ;;  %v306_v27 = vadd.f32 %v563_v37, %v285_v25  ;;  %v275_v28 = vld [vmem:[#allocation2 + $0x20] sm:$0xff] }
  0xdb   :  { %374 = vst.msk [vmem:[%s660_s3 + $0x4] sm:$0xf] %vm372_vm3, %v426_v23  ;;  %v431_v29 = vpack.c.bf16 %v298_v24, %v298_v24  ;;  %v296_v30 = vadd.f32 %v563_v37, %v275_v28  ;;  %v283_v31 = vld [vmem:[#allocation2 + $0x60] sm:$0xff] }
  0xdc   :  { %382 = vst.msk [vmem:[%s660_s3 + $0x24] sm:$0xf] %vm372_vm3, %v434_v26  ;;  %v439_v32 = vpack.c.bf16 %v306_v27, %v306_v27  ;;  %v304_v33 = vadd.f32 %v563_v37, %v283_v31 }
  0xdd   :  { %v278_v34 = vld [vmem:[#allocation2 + $0x38] sm:$0xff]  ;;  %379 = vst.msk [vmem:[%s660_s3 + $0x18] sm:$0xf] %vm372_vm3, %v431_v29  ;;  %v429_v35 = vpack.c.bf16 %v296_v30, %v296_v30 }
  0xde   :  { %v299_v36 = vadd.f32 %v563_v37, %v278_v34  ;;  %v286_v38 = vld [vmem:[#allocation2 + $0x78] sm:$0xff]  ;;  %387 = vst.msk [vmem:[%s660_s3 + $0x38] sm:$0xf] %vm372_vm3, %v439_v32  ;;  %v437_v39 = vpack.c.bf16 %v304_v33, %v304_v33 }
  0xdf   :  { %v307_v40 = vadd.f32 %v563_v37, %v286_v38  ;;  %v276_v41 = vld [vmem:[#allocation2 + $0x28] sm:$0xff]  ;;  %377 = vst.msk [vmem:[%s660_s3 + $0x10] sm:$0xf] %vm372_vm3, %v429_v35 }
  0xe0   :  { %v432_v42 = vpack.c.bf16 %v299_v36, %v299_v36  ;;  %v297_v43 = vadd.f32 %v563_v37, %v276_v41  ;;  %v284_v44 = vld [vmem:[#allocation2 + $0x68] sm:$0xff]  ;;  %385 = vst.msk [vmem:[%s660_s3 + $0x30] sm:$0xf] %vm372_vm3, %v437_v39 }
  0xe1   :  { %v440_v45 = vpack.c.bf16 %v307_v40, %v307_v40  ;;  %v305_v46 = vadd.f32 %v563_v37, %v284_v44 }
  0xe2   :  { %380 = vst.msk [vmem:[%s660_s3 + $0x1c] sm:$0xf] %vm372_vm3, %v432_v42  ;;  %v430_v47 = vpack.c.bf16 %v297_v43, %v297_v43 }
  0xe3   :  { %388 = vst.msk [vmem:[%s660_s3 + $0x3c] sm:$0xf] %vm372_vm3, %v440_v45  ;;  %v438_v48 = vpack.c.bf16 %v305_v46, %v305_v46 }
  0xe4   :  { %378 = vst.msk [vmem:[%s660_s3 + $0x14] sm:$0xf] %vm372_vm3, %v430_v47 }
  0xe5   :  { %386 = vst.msk [vmem:[%s660_s3 + $0x34] sm:$0xf] %vm372_vm3, %v438_v48 }

// kernel: pose_resnet_forward.3
= control target key start
LH: loop header
LB: loop body
LE: loop exit
PB: predicated region body
PF: predicated region fallthrough
CT: control target
= control target key end

     0   :  { %s1290_s21 = smov 0   ;;  %s1292_s22 = smov 0   ;;  %s1477_s0 = inlined_call_operand.vmem [shape: bf16[4,128,128], index: 0, kind: input, shape index: {}]   ;;  %s1478_s1 = inlined_call_operand.vmem [shape: bf16[4,128,32], index: 1, kind: input, shape index: {}]   ;;  %s1479_s2 = inlined_call_operand.vmem [shape: f32[8,32], index: 2, kind: input, shape index: {}]   ;;  %s1480_s3 = inlined_call_operand.vmem [shape: bf16[32,128], index: 3, kind: input, shape index: {}]   ;;  %s1481_s4 = inlined_call_operand.vmem [shape: f32[8,128], index: 4, kind: input, shape index: {}]   ;;  %s1482_s5 = inlined_call_operand.vmem [shape: f32[4,128,32], index: 5, kind: output, shape index: {0}]   ;;  %s1483_s6 = inlined_call_operand.vmem [shape: f32[4,128,128], index: 6, kind: output, shape index: {1}]  }
   0x1   :  { %s1294_s23 = smov 0  }
   0x2 LB: > { %s36_s24 = sadd.s32 1, %s1248_s22  ;;  %p1068_p0 = scmp.ge.s32.totalorder %s1252_s23, 1  ;;  %s1252_s23 = sphi %s1294_s23, %s17_s23   ;;  %s1248_s22 = sphi %s1292_s22, %s1485_s22   ;;  %s1244_s21 = sphi %s1290_s21, %s1484_s21  }
   0x3   : > { %p38_p1 = scmp.ge.s32.totalorder %s36_s24, 4  ;;  %p267_p2 = scmp.lt.s32.totalorder %s1252_s23, 5 }
   0x5   : > { %s1487_s24 = smov (%p38_p1, %s36_s24), 0  ;;  %p268_p3 = pnand %p1068_p0, %p267_p2 }
   0x6   : > { %p327_p4 = scmp.lt.s32.totalorder (!%p268_p3), %s1244_s21, 3 }
   0x7   : > { %271 = sbr.rel (%p268_p3) target bundleno = 490 (0x1ea), region = 40 }
   0xc   : > { %vm374_vm0 = vcmask 261120   ;;  %v1254_v0 = vmov 0.0   ;;  %s1489_s21 = smov (!%p327_p4, %s1244_s21), 3  ;;  %v1228_v17 = vld [vmem:[%s1480_s3 + $0x8] sm:$0xff]   ;;  %v1229_v18 = vld [vmem:[%s1480_s3] sm:$0xff]   ;;  %v685_v19 = vlaneseq }
   0xd   : > { %377 = vst.msk [vmem:[#allocation2 + $0x10] sm:$0xff] %vm374_vm0, %v1254_v0  ;;  %375 = vst.msk [vmem:[#allocation2] sm:$0xff] %vm374_vm0, %v1254_v0  ;;  %s1105_s25 = sshll.u32 %s1489_s21, 6  ;;  %1167 = vmatprep.subr.bf16.mxu1 %v1228_v17  ;;  %v684_v31 = vld [vmem:[%s1479_s2] sm:$0xff]  ;;  %s1107_s14 = sshll.u32 %s1489_s21, 7 }
   0xe   : > { %376 = vst.msk [vmem:[#allocation2 + $0x8] sm:$0xff] %vm374_vm0, %v1254_v0  ;;  %378 = vst.msk [vmem:[#allocation2 + $0x18] sm:$0xff] %vm374_vm0, %v1254_v0  ;;  %s347_s28 = scalar_lea.vmem %s1478_s1, %s1105_s25  ;;  %s1334_s7 = scalar_lea.vmem %s1477_s0, %s1105_s25  ;;  %1168 = vmatpush3.bf16.msra.mxu1 %v1228_v17  ;;  %v1350_v21 = vshrl.u32 %v685_v19, 7 }
   0xf   : > { %379 = vst.msk [vmem:[#allocation2 + $0x20] sm:$0xff] %vm374_vm0, %v1254_v0  ;;  %380 = vst.msk [vmem:[#allocation2 + $0x28] sm:$0xff] %vm374_vm0, %v1254_v0  ;;  %v1212_v1 = vld [vmem:[%s347_s28 + $0x38] sm:$0xff]   ;;  %v1213_v2 = vld [vmem:[%s347_s28 + $0x30] sm:$0xff]   ;;  %1169 = vmatprep.subr.bf16.mxu1 %v1229_v18  ;;  %s1372_s17 = scalar_lea.vmem %s1482_s5, %s1107_s14  ;;  %s1450_s26 = scalar_lea.vmem %s1483_s6, %s1107_s14 }
  0x10   : > { %381 = vst.msk [vmem:[#allocation2 + $0x30] sm:$0xff] %vm374_vm0, %v1254_v0  ;;  %382 = vst.msk [vmem:[#allocation2 + $0x38] sm:$0xff] %vm374_vm0, %v1254_v0  ;;  %1135 = vmatprep.subr.bf16.mxu0 %v1212_v1  ;;  %v1214_v3 = vld [vmem:[%s347_s28 + $0x28] sm:$0xff]   ;;  %v1215_v4 = vld [vmem:[%s347_s28 + $0x20] sm:$0xff]   ;;  %v687_v28 = vsub.s32 0, %v1350_v21 }
  0x11   : > { %383 = vst.msk [vmem:[#allocation2 + $0x40] sm:$0xff] %vm374_vm0, %v1254_v0  ;;  %384 = vst.msk [vmem:[#allocation2 + $0x48] sm:$0xff] %vm374_vm0, %v1254_v0  ;;  %1136 = vmatpush3.bf16.msra.mxu0 %v1212_v1  ;;  %v1220_v5 = vld [vmem:[%s1334_s7] sm:$0xff]   ;;  %v1216_v6 = vld [vmem:[%s347_s28 + $0x18] sm:$0xff]  }
  0x12   : > { %385 = vst.msk [vmem:[#allocation2 + $0x50] sm:$0xff] %vm374_vm0, %v1254_v0  ;;  %386 = vst.msk [vmem:[#allocation2 + $0x58] sm:$0xff] %vm374_vm0, %v1254_v0  ;;  %1137 = vmatprep.subr.bf16.mxu0 %v1213_v2  ;;  %1151 = vmatprep.mubr.bf16.mxu0 %v1220_v5  ;;  %v1217_v7 = vld [vmem:[%s347_s28 + $0x10] sm:$0xff]   ;;  %v1218_v8 = vld [vmem:[%s347_s28 + $0x8] sm:$0xff]   ;;  %v1361_v36 = vrot.slane %v684_v31, %v687_v28 }
  0x13   : > { %387 = vst.msk [vmem:[#allocation2 + $0x60] sm:$0xff] %vm374_vm0, %v1254_v0  ;;  %388 = vst.msk [vmem:[#allocation2 + $0x68] sm:$0xff] %vm374_vm0, %v1254_v0  ;;  %v1219_v9 = vld [vmem:[%s347_s28] sm:$0xff]   ;;  %v1221_v10 = vld [vmem:[%s1334_s7 + $0x8] sm:$0xff]   ;;  %1170 = vmatpush3.bf16.msra.mxu1 %v1229_v18 }
  0x14   : > { %389 = vst.msk [vmem:[#allocation2 + $0x70] sm:$0xff] %vm374_vm0, %v1254_v0  ;;  %390 = vst.msk [vmem:[#allocation2 + $0x78] sm:$0xff] %vm374_vm0, %v1254_v0  ;;  %v1222_v11 = vld [vmem:[%s1334_s7 + $0x10] sm:$0xff]   ;;  %v1223_v12 = vld [vmem:[%s1334_s7 + $0x18] sm:$0xff]  }
  0x15   : > { %1138 = vmatpush3.bf16.msra.mxu0 %v1213_v2  ;;  %v1224_v13 = vld [vmem:[%s1334_s7 + $0x20] sm:$0xff]   ;;  %v1225_v14 = vld [vmem:[%s1334_s7 + $0x28] sm:$0xff]   ;;  %v1226_v15 = vld [vmem:[%s1334_s7 + $0x30] sm:$0xff]  }
  0x16   : > { %1139 = vmatprep.subr.bf16.mxu0 %v1214_v3  ;;  %v1227_v16 = vld [vmem:[%s1334_s7 + $0x38] sm:$0xff]   ;;  %v393_v20 = vld [vmem:[#allocation2 + $0x10] sm:$0xff]  ;;  %v391_v23 = vld [vmem:[#allocation2] sm:$0xff] }
  0x17   : > { %v394_v26 = vld [vmem:[#allocation2 + $0x18] sm:$0xff]  ;;  %v392_v30 = vld [vmem:[#allocation2 + $0x8] sm:$0xff]  ;;  %v397_v34 = vld [vmem:[#allocation2 + $0x30] sm:$0xff] }
  0x18   : > { %v395_v38 = vld [vmem:[#allocation2 + $0x20] sm:$0xff]  ;;  %v398_v41 = vld [vmem:[#allocation2 + $0x38] sm:$0xff]  ;;  %v396_v46 = vld [vmem:[#allocation2 + $0x28] sm:$0xff] }
  0x19   : > { %1140 = vmatpush3.bf16.msra.mxu0 %v1214_v3  ;;  %v401_v52 = vld [vmem:[#allocation2 + $0x50] sm:$0xff]  ;;  %v399_v58 = vld [vmem:[#allocation2 + $0x40] sm:$0xff]  ;;  %v402_v0 = vld [vmem:[#allocation2 + $0x58] sm:$0xff] }
  0x1a   : > { %1141 = vmatprep.subr.bf16.mxu0 %v1215_v4 }
  0x1d   : > { %1142 = vmatpush3.bf16.msra.mxu0 %v1215_v4 }
  0x1e   : > { %1143 = vmatprep.subr.bf16.mxu0 %v1216_v6 }
  0x21   : > { %1144 = vmatpush3.bf16.msra.mxu0 %v1216_v6  ;;  %v400_v6 = vld [vmem:[#allocation2 + $0x48] sm:$0xff] }
  0x22   : > { %1145 = vmatprep.subr.bf16.mxu0 %v1217_v7 }
  0x25   : > { %1146 = vmatpush3.bf16.msra.mxu0 %v1217_v7 }
  0x26   : > { %1147 = vmatprep.subr.bf16.mxu0 %v1218_v8 }
  0x29   : > { %1148 = vmatpush3.bf16.msra.mxu0 %v1218_v8 }
  0x2a   : > { %1149 = vmatprep.subr.bf16.mxu0 %v1219_v9 }
  0x2d   : > { %1150 = vmatpush3.bf16.msra.mxu0 %v1219_v9 }
  0x30   : > { %1152 = vmatmul.mubr.bf16.vlgmr.msra.gmra.mxu0 %v1221_v10 }
  0x31   : > { %1155 = vmatprep.mubr.bf16.mxu0 %v1222_v11 }
  0x38   : > { %1156 = vmatmul.mubr.bf16.gmra.mxu0 %v1223_v12 }
  0x39   : > { %1159 = vmatprep.mubr.bf16.mxu0 %v1224_v13  ;;  %v405_v13 = vld [vmem:[#allocation2 + $0x70] sm:$0xff] }
  0x40   : > { %1160 = vmatmul.mubr.bf16.gmra.mxu0 %v1225_v14 }
  0x41   : > { %1163 = vmatprep.mubr.bf16.mxu0 %v1226_v15 }
  0x48   : > { %1164 = vmatmul.mubr.bf16.gmra.mxu0 %v1227_v16 }
  0xf0   : > { %v1153_v22 = vpop.f32.mrf.mxu0 }
  0xf1   : > { %v634_v24 = vadd.f32 %v1153_v22, %v393_v20  ;;  %v403_v20 = vld [vmem:[#allocation2 + $0x60] sm:$0xff] }
  0xf2   : > { %v569_v25 = vpop.f32.mrf.mxu0 }
  0xf3   : > { %651 = vst.msk [vmem:[#allocation2 + $0x10] sm:$0xff] %vm374_vm0, %v634_v24  ;;  %v632_v27 = vadd.f32 %v569_v25, %v391_v23 }
  0xf4   : > { %v1154_v29 = vpop.f32.mrf.mxu0 }
  0xf5   : > { %649 = vst.msk [vmem:[#allocation2] sm:$0xff] %vm374_vm0, %v632_v27  ;;  %v635_v32 = vadd.f32 %v1154_v29, %v394_v26  ;;  %v406_v27 = vld [vmem:[#allocation2 + $0x78] sm:$0xff] }
  0xf6   : > { %v572_v33 = vpop.f32.mrf.mxu0 }
  0xf7   : > { %652 = vst.msk [vmem:[#allocation2 + $0x18] sm:$0xff] %vm374_vm0, %v635_v32  ;;  %v633_v35 = vadd.f32 %v572_v33, %v392_v30 }
  0xf8   : > { %v1157_v37 = vpop.f32.mrf.mxu0 }
  0xf9   : > { %650 = vst.msk [vmem:[#allocation2 + $0x8] sm:$0xff] %vm374_vm0, %v633_v35  ;;  %v638_v39 = vadd.f32 %v1157_v37, %v397_v34  ;;  %v404_v34 = vld [vmem:[#allocation2 + $0x68] sm:$0xff] }
  0xfa   : > { %v585_v40 = vpop.f32.mrf.mxu0  ;;  %v670_v42 = vld [vmem:[#allocation2 + $0x10] sm:$0xff] }
  0xfb   : > { %655 = vst.msk [vmem:[#allocation2 + $0x30] sm:$0xff] %vm374_vm0, %v638_v39  ;;  %v636_v43 = vadd.f32 %v585_v40, %v395_v38  ;;  %v691_v44 = vadd.f32 %v1361_v36, %v670_v42 }
  0xfc   : > { %v1158_v45 = vpop.f32.mrf.mxu0  ;;  %v668_v47 = vld [vmem:[#allocation2] sm:$0xff] }
  0xfd   : > { %653 = vst.msk [vmem:[#allocation2 + $0x20] sm:$0xff] %vm374_vm0, %v636_v43  ;;  %v639_v48 = vadd.f32 %v1158_v45, %v398_v41  ;;  %v689_v49 = vadd.f32 %v1361_v36, %v668_v47  ;;  %v707_v50 = vmax.f32 %v691_v44, 0.0 }
  0xfe   : > { %v588_v51 = vpop.f32.mrf.mxu0  ;;  %v671_v53 = vld [vmem:[#allocation2 + $0x18] sm:$0xff] }
  0xff   : > { %656 = vst.msk [vmem:[#allocation2 + $0x38] sm:$0xff] %vm374_vm0, %v639_v48  ;;  %v637_v54 = vadd.f32 %v588_v51, %v396_v46  ;;  %v705_v55 = vmax.f32 %v689_v49, 0.0  ;;  %v692_v56 = vadd.f32 %v1361_v36, %v671_v53  ;;  %723 = vst.msk [vmem:[%s1372_s17 + $0x10] sm:$0xff] %vm374_vm0, %v707_v50 }
 0x100   : > { %v1161_v57 = vpop.f32.mrf.mxu0  ;;  %v669_v59 = vld [vmem:[#allocation2 + $0x8] sm:$0xff] }
 0x101   : > { %654 = vst.msk [vmem:[#allocation2 + $0x28] sm:$0xff] %vm374_vm0, %v637_v54  ;;  %v642_v60 = vadd.f32 %v1161_v57, %v401_v52  ;;  %v690_v61 = vadd.f32 %v1361_v36, %v669_v59  ;;  %721 = vst.msk [vmem:[%s1372_s17] sm:$0xff] %vm374_vm0, %v705_v55  ;;  %v708_v62 = vmax.f32 %v692_v56, 0.0 }
 0x102   : > { %v601_v63 = vpop.f32.mrf.mxu0  ;;  %v674_v1 = vld [vmem:[#allocation2 + $0x30] sm:$0xff] }
 0x103   : > { %659 = vst.msk [vmem:[#allocation2 + $0x50] sm:$0xff] %vm374_vm0, %v642_v60  ;;  %v640_v2 = vadd.f32 %v601_v63, %v399_v58  ;;  %v706_v3 = vmax.f32 %v690_v61, 0.0  ;;  %724 = vst.msk [vmem:[%s1372_s17 + $0x18] sm:$0xff] %vm374_vm0, %v708_v62  ;;  %v695_v4 = vadd.f32 %v1361_v36, %v674_v1  ;;  %v738_v14 = vpack.c.bf16 %v708_v62, %v707_v50 }
 0x104   : > { %v1162_v5 = vpop.f32.mrf.mxu0  ;;  %v672_v7 = vld [vmem:[#allocation2 + $0x20] sm:$0xff] }
 0x105   : > { %657 = vst.msk [vmem:[#allocation2 + $0x40] sm:$0xff] %vm374_vm0, %v640_v2  ;;  %v643_v8 = vadd.f32 %v1162_v5, %v402_v0  ;;  %722 = vst.msk [vmem:[%s1372_s17 + $0x8] sm:$0xff] %vm374_vm0, %v706_v3  ;;  %v737_v9 = vpack.c.bf16 %v706_v3, %v705_v55  ;;  %v693_v10 = vadd.f32 %v1361_v36, %v672_v7  ;;  %v711_v11 = vmax.f32 %v695_v4, 0.0  ;;  %v749_v3 = vld [vmem:[%s1481_s4] sm:$0xff] }
 0x106   : > { %v604_v12 = vpop.f32.mrf.mxu0  ;;  %v675_v15 = vld [vmem:[#allocation2 + $0x38] sm:$0xff] }
 0x107   : > { %660 = vst.msk [vmem:[#allocation2 + $0x58] sm:$0xff] %vm374_vm0, %v643_v8  ;;  %v641_v16 = vadd.f32 %v604_v12, %v400_v6  ;;  %1171 = vmatprep.mubr.msk.bf16.mxu1 %vm374_vm0, %v737_v9  ;;  %v709_v17 = vmax.f32 %v693_v10, 0.0  ;;  %v696_v18 = vadd.f32 %v1361_v36, %v675_v15  ;;  %727 = vst.msk [vmem:[%s1372_s17 + $0x30] sm:$0xff] %vm374_vm0, %v711_v11 }
 0x108   : > { %v1165_v19 = vpop.f32.mrf.mxu0  ;;  %1172 = vmatmul.mubr.msk.bf16.vlgmr.msra.gmra.mxu1 %vm374_vm0, %v738_v14  ;;  %v673_v22 = vld [vmem:[#allocation2 + $0x28] sm:$0xff] }
 0x109   : > { %658 = vst.msk [vmem:[#allocation2 + $0x48] sm:$0xff] %vm374_vm0, %v641_v16  ;;  %v646_v23 = vadd.f32 %v1165_v19, %v405_v13  ;;  %v694_v24 = vadd.f32 %v1361_v36, %v673_v22  ;;  %725 = vst.msk [vmem:[%s1372_s17 + $0x20] sm:$0xff] %vm374_vm0, %v709_v17  ;;  %v712_v25 = vmax.f32 %v696_v18, 0.0 }
 0x10a   : > { %v617_v26 = vpop.f32.mrf.mxu0  ;;  %v678_v29 = vld [vmem:[#allocation2 + $0x50] sm:$0xff] }
 0x10b   : > { %663 = vst.msk [vmem:[#allocation2 + $0x70] sm:$0xff] %vm374_vm0, %v646_v23  ;;  %v644_v30 = vadd.f32 %v617_v26, %v403_v20  ;;  %v710_v31 = vmax.f32 %v694_v24, 0.0  ;;  %728 = vst.msk [vmem:[%s1372_s17 + $0x38] sm:$0xff] %vm374_vm0, %v712_v25  ;;  %v699_v32 = vadd.f32 %v1361_v36, %v678_v29  ;;  %v740_v42 = vpack.c.bf16 %v712_v25, %v711_v11 }
 0x10c   : > { %v1166_v33 = vpop.f32.mrf.mxu0  ;;  %v676_v35 = vld [vmem:[#allocation2 + $0x40] sm:$0xff] }
 0x10d   : > { %661 = vst.msk [vmem:[#allocation2 + $0x60] sm:$0xff] %vm374_vm0, %v644_v30  ;;  %v647_v37 = vadd.f32 %v1166_v33, %v406_v27  ;;  %726 = vst.msk [vmem:[%s1372_s17 + $0x28] sm:$0xff] %vm374_vm0, %v710_v31  ;;  %v739_v38 = vpack.c.bf16 %v710_v31, %v709_v17  ;;  %v697_v39 = vadd.f32 %v1361_v36, %v676_v35  ;;  %v715_v40 = vmax.f32 %v699_v32, 0.0 }
 0x10e   : > { %v620_v41 = vpop.f32.mrf.mxu0  ;;  %v679_v43 = vld [vmem:[#allocation2 + $0x58] sm:$0xff] }
 0x10f   : > { %664 = vst.msk [vmem:[#allocation2 + $0x78] sm:$0xff] %vm374_vm0, %v647_v37  ;;  %v645_v44 = vadd.f32 %v620_v41, %v404_v34  ;;  %1175 = vmatprep.mubr.msk.bf16.mxu1 %vm374_vm0, %v739_v38  ;;  %v713_v45 = vmax.f32 %v697_v39, 0.0  ;;  %v700_v46 = vadd.f32 %v1361_v36, %v679_v43  ;;  %731 = vst.msk [vmem:[%s1372_s17 + $0x50] sm:$0xff] %vm374_vm0, %v715_v40 }
 0x110   : > { %1176 = vmatmul.mubr.msk.bf16.gmra.mxu1 %vm374_vm0, %v740_v42  ;;  %v677_v47 = vld [vmem:[#allocation2 + $0x48] sm:$0xff] }
 0x111   : > { %662 = vst.msk [vmem:[#allocation2 + $0x68] sm:$0xff] %vm374_vm0, %v645_v44  ;;  %v698_v48 = vadd.f32 %v1361_v36, %v677_v47  ;;  %729 = vst.msk [vmem:[%s1372_s17 + $0x40] sm:$0xff] %vm374_vm0, %v713_v45  ;;  %v716_v49 = vmax.f32 %v700_v46, 0.0 }
 0x112   : > { %v682_v50 = vld [vmem:[#allocation2 + $0x70] sm:$0xff] }
 0x113   : > { %v714_v51 = vmax.f32 %v698_v48, 0.0  ;;  %732 = vst.msk [vmem:[%s1372_s17 + $0x58] sm:$0xff] %vm374_vm0, %v716_v49  ;;  %v703_v52 = vadd.f32 %v1361_v36, %v682_v50  ;;  %v742_v57 = vpack.c.bf16 %v716_v49, %v715_v40 }
 0x114   : > { %v680_v53 = vld [vmem:[#allocation2 + $0x60] sm:$0xff] }
 0x115   : > { %730 = vst.msk [vmem:[%s1372_s17 + $0x48] sm:$0xff] %vm374_vm0, %v714_v51  ;;  %v741_v54 = vpack.c.bf16 %v714_v51, %v713_v45  ;;  %v701_v55 = vadd.f32 %v1361_v36, %v680_v53  ;;  %v719_v56 = vmax.f32 %v703_v52, 0.0 }
 0x116   : > { %v683_v58 = vld [vmem:[#allocation2 + $0x78] sm:$0xff] }
 0x117   : > { %1179 = vmatprep.mubr.msk.bf16.mxu1 %vm374_vm0, %v741_v54  ;;  %v717_v59 = vmax.f32 %v701_v55, 0.0  ;;  %v704_v60 = vadd.f32 %v1361_v36, %v683_v58  ;;  %735 = vst.msk [vmem:[%s1372_s17 + $0x70] sm:$0xff] %vm374_vm0, %v719_v56 }
 0x118   : > { %1180 = vmatmul.mubr.msk.bf16.gmra.mxu1 %vm374_vm0, %v742_v57  ;;  %v681_v61 = vld [vmem:[#allocation2 + $0x68] sm:$0xff] }
 0x119   : > { %v702_v62 = vadd.f32 %v1361_v36, %v681_v61  ;;  %733 = vst.msk [vmem:[%s1372_s17 + $0x60] sm:$0xff] %vm374_vm0, %v717_v59  ;;  %v720_v63 = vmax.f32 %v704_v60, 0.0  ;;  %v753_v36 = vrot.slane %v749_v3, %v687_v28 }
 0x11b   : > { %v718_v0 = vmax.f32 %v702_v62, 0.0  ;;  %736 = vst.msk [vmem:[%s1372_s17 + $0x78] sm:$0xff] %vm374_vm0, %v720_v63  ;;  %v744_v2 = vpack.c.bf16 %v720_v63, %v719_v56 }
 0x11d   : > { %734 = vst.msk [vmem:[%s1372_s17 + $0x68] sm:$0xff] %vm374_vm0, %v718_v0  ;;  %v743_v1 = vpack.c.bf16 %v718_v0, %v717_v59 }
 0x11f   : > { %1183 = vmatprep.mubr.msk.bf16.mxu1 %vm374_vm0, %v743_v1 }
 0x120   : > { %1184 = vmatmul.mubr.msk.bf16.gmra.mxu1 %vm374_vm0, %v744_v2 }
 0x1c8   : > { %v1173_v4 = vpop.f32.mrf.mxu1 }
 0x1c9   : > { %v833_v5 = vadd.f32 %v1173_v4, %v753_v36 }
 0x1ca   : > { %v824_v6 = vpop.f32.mrf.mxu1 }
 0x1cb   : > { %889 = vst [vmem:[%s1450_s26 + $0x10] sm:$0xff] %v833_v5  ;;  %v825_v7 = vadd.f32 %v824_v6, %v753_v36 }
 0x1cc   : > { %v1174_v8 = vpop.f32.mrf.mxu1 }
 0x1cd   : > { %887 = vst [vmem:[%s1450_s26] sm:$0xff] %v825_v7  ;;  %v836_v21 = vadd.f32 %v1174_v8, %v753_v36 }
 0x1ce   : > { %v827_v28 = vpop.f32.mrf.mxu1 }
 0x1cf   : > { %890 = vst [vmem:[%s1450_s26 + $0x18] sm:$0xff] %v836_v21  ;;  %v828_v9 = vadd.f32 %v827_v28, %v753_v36 }
 0x1d0   : > { %v1177_v10 = vpop.f32.mrf.mxu1 }
 0x1d1   : > { %888 = vst [vmem:[%s1450_s26 + $0x8] sm:$0xff] %v828_v9  ;;  %v849_v11 = vadd.f32 %v1177_v10, %v753_v36 }
 0x1d2   : > { %v840_v12 = vpop.f32.mrf.mxu1 }
 0x1d3   : > { %893 = vst [vmem:[%s1450_s26 + $0x30] sm:$0xff] %v849_v11  ;;  %v841_v13 = vadd.f32 %v840_v12, %v753_v36 }
 0x1d4   : > { %v1178_v14 = vpop.f32.mrf.mxu1 }
 0x1d5   : > { %891 = vst [vmem:[%s1450_s26 + $0x20] sm:$0xff] %v841_v13  ;;  %v852_v15 = vadd.f32 %v1178_v14, %v753_v36 }
 0x1d6   : > { %v843_v16 = vpop.f32.mrf.mxu1 }
 0x1d7   : > { %894 = vst [vmem:[%s1450_s26 + $0x38] sm:$0xff] %v852_v15  ;;  %v844_v17 = vadd.f32 %v843_v16, %v753_v36 }
 0x1d8   : > { %v1181_v18 = vpop.f32.mrf.mxu1 }
 0x1d9   : > { %892 = vst [vmem:[%s1450_s26 + $0x28] sm:$0xff] %v844_v17  ;;  %v865_v19 = vadd.f32 %v1181_v18, %v753_v36 }
 0x1da   : > { %v856_v20 = vpop.f32.mrf.mxu1 }
 0x1db   : > { %897 = vst [vmem:[%s1450_s26 + $0x50] sm:$0xff] %v865_v19  ;;  %v857_v22 = vadd.f32 %v856_v20, %v753_v36 }
 0x1dc   : > { %v1182_v23 = vpop.f32.mrf.mxu1 }
 0x1dd   : > { %895 = vst [vmem:[%s1450_s26 + $0x40] sm:$0xff] %v857_v22  ;;  %v868_v24 = vadd.f32 %v1182_v23, %v753_v36 }
 0x1de   : > { %v859_v25 = vpop.f32.mrf.mxu1 }
 0x1df   : > { %898 = vst [vmem:[%s1450_s26 + $0x58] sm:$0xff] %v868_v24  ;;  %v860_v26 = vadd.f32 %v859_v25, %v753_v36 }
 0x1e0   : > { %v1185_v27 = vpop.f32.mrf.mxu1 }
 0x1e1   : > { %896 = vst [vmem:[%s1450_s26 + $0x48] sm:$0xff] %v860_v26  ;;  %v881_v29 = vadd.f32 %v1185_v27, %v753_v36 }
 0x1e2   : > { %v872_v30 = vpop.f32.mrf.mxu1 }
 0x1e3   : > { %901 = vst [vmem:[%s1450_s26 + $0x70] sm:$0xff] %v881_v29  ;;  %v873_v31 = vadd.f32 %v872_v30, %v753_v36 }
 0x1e4   : > { %v1186_v32 = vpop.f32.mrf.mxu1 }
 0x1e5   : > { %899 = vst [vmem:[%s1450_s26 + $0x60] sm:$0xff] %v873_v31  ;;  %v884_v33 = vadd.f32 %v1186_v32, %v753_v36 }
 0x1e6   : > { %v875_v34 = vpop.f32.mrf.mxu1 }
 0x1e7   : > { %902 = vst [vmem:[%s1450_s26 + $0x78] sm:$0xff] %v884_v33  ;;  %v876_v35 = vadd.f32 %v875_v34, %v753_v36 }
 0x1e9   : > { %900 = vst [vmem:[%s1450_s26 + $0x68] sm:$0xff] %v876_v35 }
 0x1ea PF: > { %s17_s23 = sadd.s32 1, %s1252_s23   ;;  %s1484_s21 = smov %s1248_s22 }
 0x1eb   : > { %p14_p5 = scmp.ge.s32.totalorder %s17_s23, 6   ;;  %s1485_s22 = smov %s1487_s24 }
 0x1ed   :  { %16 = sbr.rel (!%p14_p5) target bundleno = 2 (0x2), region = 93 }

</bundles_post_ra>
